<compile_context>
chip_gen: v5e
topology: v5e:2x2
jax: 0.10.0
libtpu: 0.0.40
codegen_flags: <defaults>
</compile_context>

<pallas_src>
import jax
import jax.numpy as jnp
from jax.experimental import pallas as pl
from jax.experimental.pallas import tpu as pltpu


def _mean_max_pool_kernel(x_ref, mask_ref, out_ref, sum_acc, max_acc, cnt_acc):
    # x_ref:    (TB, TS, H)  activations, native dtype
    # mask_ref: (TB, TS)     attention mask, original dtype (lane-dense along S)
    # out_ref:  (TB, 2*H)    resident across the S grid axis
    # sum_acc:  (TB, H) f32  running masked sum
    # max_acc:  (TB, H) f32  running masked max
    # cnt_acc:  (TB, 1) f32  running mask count
    s_step = pl.program_id(1)

    @pl.when(s_step == 0)
    def _init():
        sum_acc[...] = jnp.zeros_like(sum_acc)
        cnt_acc[...] = jnp.zeros_like(cnt_acc)
        max_acc[...] = jnp.full_like(max_acc, -jnp.inf)

    x = x_ref[...]                                    # (TB, TS, H)
    m2 = mask_ref[...].astype(jnp.float32)            # (TB, TS), lane-dense

    # Mask count: lane reduce directly on the dense 2-D mask (no relayout).
    cnt_acc[...] += jnp.sum(m2, axis=1, keepdims=True)

    # Rebuild the (TB, TS, 1) column in-kernel (XLU relayout; slack unit here).
    m = m2.astype(x.dtype)[:, :, None]                # (TB, TS, 1)

    xm = x * m                                        # 0 at padded positions
    # bias column: 0 at valid positions, -10000 at padded (torch fill value).
    bias = (m - 1.0) * 10000.0                        # (TB, TS, 1)

    # Tile-level reductions in x.dtype; only cross-tile accumulators are f32.
    # (Exact for f32 inputs / 0-1 masks; for bf16 this trades a little sum
    # precision for halved vreg/VALU pressure on the reduce path.)
    sum_acc[...] += jnp.sum(xm, axis=1).astype(jnp.float32)
    max_acc[...] = jnp.maximum(
        max_acc[...], jnp.max(xm + bias, axis=1).astype(jnp.float32)
    )

    @pl.when(s_step == pl.num_programs(1) - 1)
    def _finalize():
        h = max_acc.shape[-1]
        cnt = jnp.maximum(cnt_acc[...], 1e-9)         # torch.clamp(min=1e-9)
        inv = pl.reciprocal(cnt, approx=True)         # EUP slot (off VPU path)
        inv = inv * (2.0 - cnt * inv)                 # one Newton step
        # Two sliced stores instead of a concatenate (no (TB, 2H) temp).
        out_ref[:, pl.ds(0, h)] = (sum_acc[...] * inv).astype(out_ref.dtype)
        out_ref[:, pl.ds(h, h)] = max_acc[...].astype(out_ref.dtype)


def _round_up(n, m):
    return ((n + m - 1) // m) * m


def _choose_tiling(B, S, H, x_bytes, m_bytes, out_bytes):
    """Pick (vmem_limit_bytes, TB, TS).

    Constraints (2-D mask block (TB, TS) + 3-D x block (TB, TS, H)):
      TB must be a multiple of 8 or == B; TS a multiple of 128 or == S.
    Preferences (perf review): keep >= 8 (else >= 2) batch blocks for v7x
    megacore, prefer TS == S (contiguous DMA), cap the x block at ~4 MiB.
    """
    tb_cands = sorted({t for t in range(8, B + 1, 8) if B % t == 0} | {B})
    ts_cands = sorted({t for t in range(128, S + 1, 128) if S % t == 0} | {S})

    X_BLOCK_CAP = 4 << 20  # ~4 MiB per buffer already saturates HBM BW

    def x_blk_bytes(tb, ts):
        return tb * ts * H * x_bytes

    chosen = None
    for min_blocks in (8, 2, 1):  # v7x: prefer >= 8, then >= 2 batch blocks
        cands = []
        for tb in tb_cands:
            if B // tb < min_blocks:
                continue
            for ts in ts_cands:
                blk = x_blk_bytes(tb, ts)
                if blk <= X_BLOCK_CAP:
                    # Prefer full-S tiles (contiguous DMA), then largest block.
                    cands.append(((ts == S, blk, tb), (tb, ts)))
        if cands:
            chosen = max(cands)[1]
            break
    if chosen is None:
        # Nothing fits the cap: smallest legal tile; vmem limit grows below.
        # TODO(synk): pad S to a multiple of 128 for pathological (prime) S
        # with very large H so the sequence axis can still be split.
        chosen = (tb_cands[0], ts_cands[0])
    tb, ts = chosen

    # Actual VMEM footprint of this tiling (double-buffered I/O + scratch).
    x_blk = tb * ts * H * x_bytes
    m_blk = _round_up(tb, 8) * _round_up(ts, 128) * m_bytes
    o_blk = _round_up(tb, 8) * _round_up(2 * H, 128) * out_bytes
    scr = _round_up(tb, 8) * (2 * _round_up(H, 128) + 128) * 4
    need = 2 * (x_blk + m_blk + o_blk) + scr

    try:
        vmem_phys = pltpu.get_tpu_info().vmem_capacity_bytes
    except Exception:
        vmem_phys = 64 << 20  # v7x per-TC VMEM (smallest in fleet)
    # Small scoped limit (plenty once blocks are a few MiB); only grow it if
    # the fallback tile genuinely needs more, never past ~75% of physical.
    vmem_limit = min(max(need + (2 << 20), 32 << 20), int(vmem_phys * 0.75))
    return vmem_limit, tb, ts


def mean_max_pooling(x, attention_mask, input_ids=None, cfg=None):
    """x: (B, S, H); attention_mask: (B, S) of {0,1}. Returns (B, 2*H) in x.dtype."""
    del input_ids, cfg  # unused by the reference forward
    B, S, H = x.shape
    assert attention_mask.shape == (B, S), attention_mask.shape

    # Pass the mask as-is (2-D, original dtype): dense HBM layout, dense DMA,
    # no wrapper-side reshape/cast round-trip.
    if attention_mask.dtype == jnp.bool_:
        attention_mask = attention_mask.astype(jnp.float32)

    x_bytes = jnp.dtype(x.dtype).itemsize
    m_bytes = jnp.dtype(attention_mask.dtype).itemsize
    vmem_limit, TB, TS = _choose_tiling(B, S, H, x_bytes, m_bytes, x_bytes)
    grid = (B // TB, S // TS)

    return pl.pallas_call(
        _mean_max_pool_kernel,
        out_shape=jax.ShapeDtypeStruct((B, 2 * H), x.dtype),
        grid_spec=pltpu.PrefetchScalarGridSpec(
            num_scalar_prefetch=0,
            grid=grid,
            in_specs=[
                pl.BlockSpec((TB, TS, H), lambda b, s: (b, s, 0)),
                pl.BlockSpec((TB, TS), lambda b, s: (b, s)),
            ],
            out_specs=pl.BlockSpec((TB, 2 * H), lambda b, s: (b, 0)),
            scratch_shapes=[
                pltpu.VMEM((TB, H), jnp.float32),   # running masked sum
                pltpu.VMEM((TB, H), jnp.float32),   # running masked max
                pltpu.VMEM((TB, 1), jnp.float32),   # running mask count
            ],
        ),
        compiler_params=pltpu.CompilerParams(
            dimension_semantics=("parallel", "arbitrary"),
            vmem_limit_bytes=vmem_limit,
        ),
    )(x, attention_mask)


def mean_max_pooling_ref(x, attention_mask):
    """Pure-JAX reference mirroring the PyTorch forward."""
    m = attention_mask[..., None].astype(jnp.float32)
    xf = x.astype(jnp.float32)
    sum_emb = jnp.sum(xf * m, axis=1)
    sum_mask = jnp.clip(jnp.sum(m, axis=1), min=1e-9)
    mean_emb = sum_emb / sum_mask
    masked_x = jnp.where(m == 0.0, -10000.0, xf)
    max_emb = jnp.max(masked_x, axis=1)
    return jnp.concatenate([mean_emb, max_emb], axis=1).astype(x.dtype)


if __name__ == "__main__":
    key = jax.random.PRNGKey(0)
    B, S, H = 2, 8, 32  # batch, seq, hidden

    kx, _ = jax.random.split(key)
    x = jax.random.normal(kx, (B, S, H), dtype=jnp.float32)
    # deterministic mask with a few padded (0) positions at the tail
    lengths = jnp.array([S, S - 3], dtype=jnp.int32)
    attention_mask = (jnp.arange(S)[None, :] < lengths[:, None]).astype(
        jnp.float32
    )

    out = mean_max_pooling(x, attention_mask)
    jax.block_until_ready(out)

    ref = mean_max_pooling_ref(x, attention_mask)
    assert out.shape == (B, 2 * H), out.shape
    assert jnp.allclose(out, ref, atol=1e-4, rtol=1e-4), float(
        jnp.max(jnp.abs(out - ref))
    )

    print("KERNEL_OK")
</pallas_src>

<mosaic_0001>
module attributes {stable_mosaic.version = 11 : i64} {
  func.func @_mean_max_pool_kernel(%arg0: i32, %arg1: i32, %arg2: memref<2x8x32xf32, #tpu.memory_space<vmem>>, %arg3: memref<2x8xf32, #tpu.memory_space<vmem>>, %arg4: memref<2x64xf32, #tpu.memory_space<vmem>>, %arg5: memref<2x32xf32, #tpu.memory_space<vmem>>, %arg6: memref<2x32xf32, #tpu.memory_space<vmem>>, %arg7: memref<2x1xf32, #tpu.memory_space<vmem>>) attributes {dimension_semantics = [#tpu.dimension_semantics<parallel>, #tpu.dimension_semantics<arbitrary>], iteration_bounds = array<i64: 1, 1>, scalar_prefetch = 0 : i64, scratch_operands = 3 : i64, tpu.core_type = #tpu.core_type<tc>, window_params = [{transform_indices = @transform_0, window_bounds = array<i64: 2, 8, 32>}, {transform_indices = @transform_1, window_bounds = array<i64: 2, 8>}, {transform_indices = @transform_2, window_bounds = array<i64: 2, 64>}]} {
    %c0_i32 = arith.constant 0 : i32
    %0 = arith.cmpi eq, %arg1, %c0_i32 : i32
    %1 = arith.extui %0 : i1 to i32
    %c0_i32_0 = arith.constant 0 : i32
    %2 = arith.cmpi ne, %1, %c0_i32_0 : i32
    scf.if %2 {
      %cst_23 = arith.constant 0.000000e+00 : f32
      %30 = vector.broadcast %cst_23 : f32 to vector<2x32xf32>
      %c0_24 = arith.constant 0 : index
      %c0_25 = arith.constant 0 : index
      %31 = vector.load %arg5[%c0_24, %c0_25] : memref<2x32xf32, #tpu.memory_space<vmem>>, vector<2x32xf32>
      tpu.vector_store %arg5[%c0_24, %c0_25], %30 {strides = array<i32>} : memref<2x32xf32, #tpu.memory_space<vmem>>, vector<2x32xf32>,
      %cst_26 = arith.constant 0.000000e+00 : f32
      %32 = vector.broadcast %cst_26 : f32 to vector<2x1xf32>
      %c0_27 = arith.constant 0 : index
      %c0_28 = arith.constant 0 : index
      %33 = vector.load %arg7[%c0_27, %c0_28] : memref<2x1xf32, #tpu.memory_space<vmem>>, vector<2x1xf32>
      tpu.vector_store %arg7[%c0_27, %c0_28], %32 {strides = array<i32>} : memref<2x1xf32, #tpu.memory_space<vmem>>, vector<2x1xf32>,
      %cst_29 = arith.constant 0xFF800000 : f32
      %34 = vector.broadcast %cst_29 : f32 to vector<2x32xf32>
      %c0_30 = arith.constant 0 : index
      %c0_31 = arith.constant 0 : index
      %35 = vector.load %arg6[%c0_30, %c0_31] : memref<2x32xf32, #tpu.memory_space<vmem>>, vector<2x32xf32>
      tpu.vector_store %arg6[%c0_30, %c0_31], %34 {strides = array<i32>} : memref<2x32xf32, #tpu.memory_space<vmem>>, vector<2x32xf32>,
    } else {
    }
    %c0 = arith.constant 0 : index
    %c0_1 = arith.constant 0 : index
    %c0_2 = arith.constant 0 : index
    %3 = vector.load %arg2[%c0, %c0_1, %c0_2] : memref<2x8x32xf32, #tpu.memory_space<vmem>>, vector<2x8x32xf32>
    %c0_3 = arith.constant 0 : index
    %c0_4 = arith.constant 0 : index
    %4 = vector.load %arg3[%c0_3, %c0_4] : memref<2x8xf32, #tpu.memory_space<vmem>>, vector<2x8xf32>
    %c0_5 = arith.constant 0 : index
    %c0_6 = arith.constant 0 : index
    %5 = vector.load %arg7[%c0_5, %c0_6] : memref<2x1xf32, #tpu.memory_space<vmem>>, vector<2x1xf32>
    %cst = arith.constant dense<0.000000e+00> : vector<2xf32>
    %6 = vector.multi_reduction <add>, %4, %cst [1] : vector<2x8xf32> to vector<2xf32>
    %7 = vector.shape_cast %6 : vector<2xf32> to vector<2x1xf32>
    %8 = arith.addf %5, %7 : vector<2x1xf32>
    %c0_7 = arith.constant 0 : index
    %c0_8 = arith.constant 0 : index
    %9 = vector.load %arg7[%c0_7, %c0_8] : memref<2x1xf32, #tpu.memory_space<vmem>>, vector<2x1xf32>
    tpu.vector_store %arg7[%c0_7, %c0_8], %8 {strides = array<i32>} : memref<2x1xf32, #tpu.memory_space<vmem>>, vector<2x1xf32>,
    %10 = vector.shape_cast %4 : vector<2x8xf32> to vector<2x8x1xf32>
    %11 = vector.broadcast %10 : vector<2x8x1xf32> to vector<2x8x32xf32>
    %12 = arith.mulf %3, %11 : vector<2x8x32xf32>
    %cst_9 = arith.constant 1.000000e+00 : f32
    %13 = vector.broadcast %cst_9 : f32 to vector<2x8x1xf32>
    %14 = arith.subf %10, %13 : vector<2x8x1xf32>
    %cst_10 = arith.constant 1.000000e+04 : f32
    %15 = vector.broadcast %cst_10 : f32 to vector<2x8x1xf32>
    %16 = arith.mulf %14, %15 : vector<2x8x1xf32>
    %c0_11 = arith.constant 0 : index
    %c0_12 = arith.constant 0 : index
    %17 = vector.load %arg5[%c0_11, %c0_12] : memref<2x32xf32, #tpu.memory_space<vmem>>, vector<2x32xf32>
    %cst_13 = arith.constant dense<0.000000e+00> : vector<2x32xf32>
    %18 = vector.multi_reduction <add>, %12, %cst_13 [1] : vector<2x8x32xf32> to vector<2x32xf32>
    %19 = arith.addf %17, %18 : vector<2x32xf32>
    %c0_14 = arith.constant 0 : index
    %c0_15 = arith.constant 0 : index
    %20 = vector.load %arg5[%c0_14, %c0_15] : memref<2x32xf32, #tpu.memory_space<vmem>>, vector<2x32xf32>
    tpu.vector_store %arg5[%c0_14, %c0_15], %19 {strides = array<i32>} : memref<2x32xf32, #tpu.memory_space<vmem>>, vector<2x32xf32>,
    %c0_16 = arith.constant 0 : index
    %c0_17 = arith.constant 0 : index
    %21 = vector.load %arg6[%c0_16, %c0_17] : memref<2x32xf32, #tpu.memory_space<vmem>>, vector<2x32xf32>
    %22 = vector.broadcast %16 : vector<2x8x1xf32> to vector<2x8x32xf32>
    %23 = arith.addf %12, %22 : vector<2x8x32xf32>
    %cst_18 = arith.constant dense<0xFF800000> : vector<2x32xf32>
    %24 = vector.multi_reduction <maximumf>, %23, %cst_18 [1] : vector<2x8x32xf32> to vector<2x32xf32>
    %25 = arith.maximumf %21, %24 : vector<2x32xf32>
    %c0_19 = arith.constant 0 : index
    %c0_20 = arith.constant 0 : index
    %26 = vector.load %arg6[%c0_19, %c0_20] : memref<2x32xf32, #tpu.memory_space<vmem>>, vector<2x32xf32>
    tpu.vector_store %arg6[%c0_19, %c0_20], %25 {strides = array<i32>} : memref<2x32xf32, #tpu.memory_space<vmem>>, vector<2x32xf32>,
    %c0_i32_21 = arith.constant 0 : i32
    %27 = arith.cmpi eq, %arg1, %c0_i32_21 : i32
    %28 = arith.extui %27 : i1 to i32
    %c0_i32_22 = arith.constant 0 : i32
    %29 = arith.cmpi ne, %28, %c0_i32_22 : i32
    scf.if %29 {
      %c0_23 = arith.constant 0 : index
      %c0_24 = arith.constant 0 : index
      %30 = vector.load %arg7[%c0_23, %c0_24] : memref<2x1xf32, #tpu.memory_space<vmem>>, vector<2x1xf32>
      %cst_25 = arith.constant 9.99999971E-10 : f32
      %31 = vector.broadcast %cst_25 : f32 to vector<2x1xf32>
      %32 = arith.maximumf %30, %31 : vector<2x1xf32>
      %33 = tpu.reciprocal %32 {approx = true} : vector<2x1xf32> -> vector<2x1xf32>
      %34 = arith.mulf %32, %33 : vector<2x1xf32>
      %cst_26 = arith.constant 2.000000e+00 : f32
      %35 = vector.broadcast %cst_26 : f32 to vector<2x1xf32>
      %36 = arith.subf %35, %34 : vector<2x1xf32>
      %37 = arith.mulf %33, %36 : vector<2x1xf32>
      %c0_27 = arith.constant 0 : index
      %c0_28 = arith.constant 0 : index
      %38 = vector.load %arg5[%c0_27, %c0_28] : memref<2x32xf32, #tpu.memory_space<vmem>>, vector<2x32xf32>
      %39 = vector.broadcast %37 : vector<2x1xf32> to vector<2x32xf32>
      %40 = arith.mulf %38, %39 : vector<2x32xf32>
      %c0_29 = arith.constant 0 : index
      %c0_30 = arith.constant 0 : index
      %41 = vector.load %arg4[%c0_29, %c0_30] : memref<2x64xf32, #tpu.memory_space<vmem>>, vector<2x32xf32>
      tpu.vector_store %arg4[%c0_29, %c0_30], %40 {strides = array<i32>} : memref<2x64xf32, #tpu.memory_space<vmem>>, vector<2x32xf32>,
      %c0_31 = arith.constant 0 : index
      %c0_32 = arith.constant 0 : index
      %42 = vector.load %arg6[%c0_31, %c0_32] : memref<2x32xf32, #tpu.memory_space<vmem>>, vector<2x32xf32>
      %c0_33 = arith.constant 0 : index
      %c32 = arith.constant 32 : index
      %43 = vector.load %arg4[%c0_33, %c32] : memref<2x64xf32, #tpu.memory_space<vmem>>, vector<2x32xf32>
      tpu.vector_store %arg4[%c0_33, %c32], %42 {strides = array<i32>} : memref<2x64xf32, #tpu.memory_space<vmem>>, vector<2x32xf32>,
    } else {
    }
    return
  }
  func.func @transform_0(%arg0: i32, %arg1: i32) -> (i32, i32, i32) {
    %c0_i32 = arith.constant 0 : i32
    %c0_i32_0 = arith.constant 0 : i32
    return %arg0, %arg1, %c0_i32 : i32, i32, i32
  }
  func.func @transform_1(%arg0: i32, %arg1: i32) -> (i32, i32) {
    %c0_i32 = arith.constant 0 : i32
    return %arg0, %arg1 : i32, i32
  }
  func.func @transform_2(%arg0: i32, %arg1: i32) -> (i32, i32) {
    %c0_i32 = arith.constant 0 : i32
    %c0_i32_0 = arith.constant 0 : i32
    return %arg0, %c0_i32 : i32, i32
  }
}

</mosaic_0001>

<bundles_post_ra>
// kernel: tpu_custom_call.1
= control target key start
LH: loop header
LB: loop body
LE: loop exit
PB: predicated region body
PF: predicated region fallthrough
CT: control target
= control target key end

     0   :  { %7 = vsyncpa [#allocation6], 0  ;;  %s309_s0 = inlined_call_operand.hbm [shape: f32[2,8,32], index: 0, kind: input, shape index: {}]   ;;  %s310_s1 = inlined_call_operand.hbm [shape: f32[2,8], index: 1, kind: input, shape index: {}]   ;;  %s311_s2 = inlined_call_operand.hbm [shape: f32[2,64], index: 2, kind: output, shape index: {}]  }
   0x1   :  { %8 = vsyncpa [#allocation9], 0 }
   0x2   :  { %9 = vsyncpa [#allocation7], 0  ;;  %s14_s11 = sshll.u32 %s309_s0, 4  ;;  %s265_s12 = smov [#allocation5]   ;;  %s15_s11 = int_to_ptr.hbm [resolvable:$true] %s14_s11 }
   0x3   :  { %s16_s13 = sshll.u32 %s265_s12, 4  ;;  %s28_s16 = sshll.u32 %s310_s1, 4  ;;  %s17_s13 = int_to_ptr.vmem [resolvable:$true] %s16_s13  ;;  %s29_s16 = int_to_ptr.hbm [resolvable:$true] %s28_s16 }
   0x4   :  { %s266_s17 = smov 128   ;;  %s267_s18 = smov 8  }
   0x5   :  { %22 = dma.hbm_to_vmem [thread:$0]  %s15_s11, 256, %s17_s13, [#allocation6], %s266_s17, %s266_s17, %s267_s18  }
   0x6   :  { %s268_s19 = smov [#allocation8]  }
   0x7   :  { %s30_s20 = sshll.u32 %s268_s19, 4  ;;  %s31_s20 = int_to_ptr.vmem [resolvable:$true] %s30_s20 }
   0x8   :  { %33 = dma.hbm_to_vmem [thread:$0]  %s29_s16, 32, %s31_s20, [#allocation9]  }
   0x9   :  { %259 = dma.done.wait [#allocation6], 256  }
   0xa   :  { %260 = vsyncadd [#allocation6], 4294967040 }
   0xb   :  { %261 = dma.done.wait [#allocation9], 32  }
   0xc   :  { %262 = vsyncadd [#allocation9], 4294967264  ;;  %v63_v0 = vlaneseq  ;;  %vm46_vm0 = vcmask 254976   ;;  %vm48_vm1 = vcmask 1024   ;;  %v269_v1 = vmov 0.0   ;;  %v51_v11 = vld [vmem:[#allocation5] sm:$0xff] }
   0xd   :  { %47 = vst.msk [vmem:[#allocation2] sm:$0x3] %vm46_vm0, %v269_v1  ;;  %vm55_vm2 = vcmask 58368   ;;  %v53_v3 = vld [vmem:[#allocation8] sm:$0x3]  ;;  %v270_v7 = vmov -inf  }
   0xe   :  { %v64_v2 = vshrl.u32 %v63_v0, 7  ;;  %49 = vst.msk [vmem:[#allocation4] sm:$0x3] %vm48_vm1, %v269_v1  ;;  %v56_v4 = vsel %vm55_vm2, %v53_v3, 0.0  ;;  %v62_v5 = vperm.slane %v53_v3, 0  ;;  %v69_v6 = vperm.slane %v53_v3, 1 }
   0xf   :  { %57 = vadd.xlane.f32.xlu1 %v56_v4  ;;  %50 = vst.msk [vmem:[#allocation3] sm:$0x3] %vm46_vm0, %v270_v7  ;;  %v271_v8 = vmov 0   ;;  %vm83_vm3 = vcmask 261120   ;;  %v52_v21 = vld [vmem:[#allocation5 + $0x8] sm:$0xff]  ;;  %vm100_vm4 = vcmask 1041409  }
  0x10   :  { %182 = vset.pattern.permute.xlu0 %v64_v2  ;;  %183 = vset.pattern.permute.xlu1 %v271_v8  ;;  %s272_s0 = smov 32   ;;  %s273_s1 = smov [#allocation10]   ;;  %vm151_vm5 = vcmask 517376  }
  0x11   :  { %s158_s21 = sshll.u32 %s273_s1, 4  ;;  %s160_s24 = sshll.u32 %s311_s2, 4  ;;  %s159_s21 = int_to_ptr.vmem [resolvable:$true] %s158_s21  ;;  %s161_s24 = int_to_ptr.hbm [resolvable:$true] %s160_s24 }
  0x14   :  { %v82_v52 = vld [vmem:[#allocation2] sm:$0x3] }
  0x15   :  { %v54_v9 = vld [vmem:[#allocation4] sm:$0x3] }
  0x16   :  { %v106_v60 = vld [vmem:[#allocation3] sm:$0x3] }
  0x18   :  { %67 = vperm.xlu0 %182, %v62_v5  }
  0x20   :  { %74 = vperm.xlu0 %182, %v69_v6  }
  0x28   :  { %184 = vset.pattern.permute.xlu0 %v271_v8 }
  0x82   :  { %v58_v10 = vpop.xlane.xlu1 %57 }
  0x83   :  { %v59_v12 = vadd.f32 %v58_v10, %v54_v9 }
  0x85   :  { %61 = vst.msk [vmem:[#allocation4] sm:$0x3] %vm48_vm1, %v59_v12 }
  0x8a   :  { %v68_v13 = vpop.permute.xlu0 %67 }
  0x8b   :  { %v76_v14 = vmul.f32 %v68_v13, %v51_v11  ;;  %v171_v15 = vadd.f32 -1.0, %v68_v13 }
  0x8c   :  { %v132_v25 = vld [vmem:[#allocation4] sm:$0x3] }
  0x8d   :  { %v80_v16 = vmul.f32 10000.0, %v171_v15  ;;  %v84_v17 = vsel %vm83_vm3, %v76_v14, 0.0  ;;  %v133_v29 = vmax.f32 %v132_v25, 1e-09 }
  0x8e   :  { %v85_v18 = vrot.slane %v84_v17, 4 }
  0x8f   :  { %v107_v19 = vadd.f32 %v80_v16, %v76_v14  ;;  %185 = vrcp.f32 %v133_v29 }
  0x90   :  { %v86_v20 = vadd.f32 %v85_v18, %v84_v17 }
  0x91   :  { %v109_v22 = vsel %vm83_vm3, %v107_v19, -inf }
  0x92   :  { %v110_v23 = vrot.slane %v109_v22, 4  ;;  %v75_v24 = vpop.permute.xlu0 %74  ;;  %v87_v26 = vrot.slane %v86_v20, 2 }
  0x93   :  { %v77_v27 = vmul.f32 %v75_v24, %v52_v21  ;;  %v172_v28 = vadd.f32 -1.0, %v75_v24 }
  0x94   :  { %v111_v30 = vmax.f32 %v109_v22, %v110_v23  ;;  %v88_v34 = vadd.f32 %v87_v26, %v86_v20 }
  0x95   :  { %v81_v31 = vmul.f32 10000.0, %v172_v28  ;;  %v91_v32 = vsel %vm83_vm3, %v77_v27, 0.0  ;;  %v186_v41 = vpop.eup %185 }
  0x96   :  { %v92_v33 = vrot.slane %v91_v32, 4  ;;  %v112_v36 = vrot.slane %v111_v30, 2  ;;  %v89_v42 = vrot.slane %v88_v34, 1  ;;  %v135_v46 = vmul.f32 %v186_v41, %v133_v29 }
  0x97   :  { %v108_v35 = vadd.f32 %v81_v31, %v77_v27 }
  0x98   :  { %v93_v37 = vadd.f32 %v92_v33, %v91_v32  ;;  %v113_v43 = vmax.f32 %v111_v30, %v112_v36  ;;  %v136_v49 = vsub.f32 2.0, %v135_v46  ;;  %v90_v50 = vadd.f32 %v89_v42, %v88_v34 }
  0x99   :  { %v116_v38 = vsel %vm83_vm3, %v108_v35, -inf }
  0x9a   :  { %v94_v39 = vrot.slane %v93_v37, 2  ;;  %v117_v40 = vrot.slane %v116_v38, 4  ;;  %v114_v51 = vrot.slane %v113_v43, 1  ;;  %v137_v55 = vmul.f32 %v186_v41, %v136_v49 }
  0x9c   :  { %v95_v44 = vadd.f32 %v94_v39, %v93_v37  ;;  %v118_v45 = vmax.f32 %v116_v38, %v117_v40  ;;  %141 = vperm.xlu1 %183, %v137_v55   ;;  %v115_v59 = vmax.f32 %v113_v43, %v114_v51 }
  0x9e   :  { %v96_v47 = vrot.slane %v95_v44, 1  ;;  %v119_v48 = vrot.slane %v118_v45, 2 }
  0xa0   :  { %v97_v53 = vadd.f32 %v96_v47, %v95_v44  ;;  %v120_v54 = vmax.f32 %v118_v45, %v119_v48 }
  0xa2   :  { %v101_v56 = vsel %vm100_vm4, %v97_v53, %v90_v50  ;;  %v121_v57 = vrot.slane %v120_v54, 1 }
  0xa3   :  { %v103_v58 = vadd.f32 %v101_v56, %v82_v52 }
  0xa4   :  { %v122_v61 = vmax.f32 %v120_v54, %v121_v57 }
  0xa5   :  { %105 = vst.msk [vmem:[#allocation2] sm:$0x3] %vm46_vm0, %v103_v58 }
  0xa6   :  { %v125_v62 = vsel %vm100_vm4, %v122_v61, %v115_v59 }
  0xa7   :  { %v127_v63 = vmax.f32 %v106_v60, %v125_v62 }
  0xa9   :  { %128 = vst.msk [vmem:[#allocation3] sm:$0x3] %vm46_vm0, %v127_v63 }
  0xac   :  { %v138_v2 = vld [vmem:[#allocation2] sm:$0x3] }
  0xb0   :  { %v146_v0 = vld [vmem:[#allocation3] sm:$0x3] }
  0xb1   :  { %148 = vrot.lane.b32.xlu2 %v146_v0, %s272_s0 }
 0x10b   :  { %v149_v4 = vpop.permute.xlu2 %148 }
 0x10e   :  { %v142_v1 = vpop.permute.xlu1 %141 }
 0x10f   :  { %v144_v3 = vmul.f32 %v142_v1, %v138_v2 }
 0x111   :  { %145 = vst.msk [vmem:[#allocation10] sm:$0x3] %vm46_vm0, %v144_v3 }
 0x112   :  { %152 = vst.msk [vmem:[#allocation10] sm:$0x3] %vm151_vm5, %v149_v4 }
 0x113   :  { %163 = dma.vmem_to_hbm [thread:$0]  %s159_s21, 32, %s161_s24, [#allocation7]  }
 0x114   :  { %263 = dma.done.wait [#allocation7], 32  }
 0x115   :  { %264 = vsyncadd [#allocation7], 4294967264 }
 0x116   :  { %168 = vsyncpa [#allocation6], 1 }
 0x117   :  { %169 = vsyncpa [#allocation9], 1 }
 0x118   :  { %170 = vsyncpa [#allocation7], 1 }

</bundles_post_ra>
